<compile_context>
chip_gen: v7x
topology: tpu7x:2x2x1
jax: 0.10.0
libtpu: 0.0.40
codegen_flags: <defaults>
</compile_context>

<pallas_src>
import jax
import jax.numpy as jnp
from jax.experimental import pallas as pl
from jax.experimental.pallas import tpu as pltpu


def _identity_kernel(x_hbm_ref, o_hbm_ref, done_ref):
    # NNetwork.forward is `out = x`. The output HBM buffer is aliased to the
    # input HBM buffer (input_output_aliases={0: 0}), so the result bytes are
    # already in place: no DMA, no compute. Store a scalar flag into SMEM
    # scratch so the kernel body is non-empty; this is a single scalar store
    # and never touches HBM or VMEM.
    del x_hbm_ref, o_hbm_ref
    done_ref[0] = jnp.int32(1)


def _identity_pallas(x: jax.Array) -> jax.Array:
    """Pallas forward pass of NNetwork: identity (out = x)."""
    return pl.pallas_call(
        _identity_kernel,
        out_shape=jax.ShapeDtypeStruct(x.shape, x.dtype),
        in_specs=[pl.BlockSpec(memory_space=pl.ANY)],   # raw HBM ref, no auto-DMA
        out_specs=pl.BlockSpec(memory_space=pl.ANY),    # raw HBM ref, no auto-DMA
        scratch_shapes=[pltpu.SMEM((1,), jnp.int32)],
        input_output_aliases={0: 0},                    # out buffer == in buffer
    )(x)


# Non-donating entry point (safe when the caller still needs `x`).
# For true zero-copy, wrap with jax.jit(_identity_pallas, donate_argnums=(0,)).
nnetwork_forward = jax.jit(_identity_pallas)


if __name__ == "__main__":
    key = jax.random.PRNGKey(0)
    # NCHW-style input, small shapes: batch=2, channels=4, spatial=16x16.
    x = jax.random.normal(key, (2, 4, 16, 16), dtype=jnp.float32)

    out = nnetwork_forward(x)
    jax.block_until_ready(out)

    assert out.shape == x.shape
    assert out.dtype == x.dtype
    assert bool(jnp.all(out == x))

    print("KERNEL_OK")
</pallas_src>

<mosaic_0001>
module attributes {stable_mosaic.version = 11 : i64} {
  func.func @_identity_kernel(%arg0: memref<2x4x16x16xf32, #tpu.memory_space<any>>, %arg1: memref<2x4x16x16xf32, #tpu.memory_space<any>>, %arg2: memref<1xi32, #tpu.memory_space<smem>>) attributes {dimension_semantics = [], scalar_prefetch = 0 : i64, scratch_operands = 1 : i64, tpu.core_type = #tpu.core_type<tc>} {
    %c1_i32 = arith.constant 1 : i32
    %c0 = arith.constant 0 : index
    %0 = memref.load %arg2[%c0] : memref<1xi32, #tpu.memory_space<smem>>
    memref.store %c1_i32, %arg2[%c0] : memref<1xi32, #tpu.memory_space<smem>>
    return
  }
}

</mosaic_0001>

<bundles_post_ra>
// kernel: _identity_pallas.1
= control target key start
LH: loop header
LB: loop body
LE: loop exit
PB: predicated region body
PF: predicated region fallthrough
CT: control target
= control target key end

     0   :  { %s18_s0 = inlined_call_operand.hbm [shape: f32[2,4,16,16], index: 0, kind: input, shape index: {}, may-alias: {0,1}]   ;;  %s19_s1 = inlined_call_operand.hbm [shape: f32[2,4,16,16], index: 1, kind: output, shape index: {}, may-alias: {0,1}]  }

</bundles_post_ra>
